<compile_context>
chip_gen: v6e
topology: v6e:2x2x1
jax: 0.10.0
libtpu: 0.0.40
codegen_flags: <defaults>
</compile_context>

<pallas_src>
import functools
import math

import jax
import jax.numpy as jnp
from jax import lax
from jax.experimental import pallas as pl
from jax.experimental.pallas import tpu as pltpu


# --------------------------------------------------------------------------- #
# helpers
# --------------------------------------------------------------------------- #
def _sublane_multiple(dtype) -> int:
    """Sublane packing factor: 8 for 4-byte, 16 for 2-byte, 32 for 1-byte dtypes."""
    return max(8, 32 // jnp.dtype(dtype).itemsize)


def _pick_tile(total: int, preferred: int, multiple: int) -> int:
    """Largest tile <= preferred dividing `total` and a multiple of `multiple`
    (sublane/lane alignment), or the full axis while that is still cheap."""
    if total <= preferred:
        return total
    start = (preferred // multiple) * multiple
    for t in range(start, multiple - 1, -multiple):
        if total % t == 0:
            return t
    if total <= 4 * preferred:      # full-axis fallback only while it is small
        return total
    raise ValueError(
        f"no aligned tile <= {preferred} divides axis of size {total}; "
        f"pad the input to a multiple of {multiple}")


def _vmem_limit_bytes() -> int:
    """~80% of the chip's VMEM capped at 100 MiB (v5e/v6e: 128 MiB, v7x: 64 MiB/TC)."""
    try:
        cap = int(pltpu.get_tpu_info().vmem_capacity_bytes)
    except Exception:               # older jax / query unavailable -> conservative
        cap = 64 * 1024 * 1024
    return min(int(cap * 0.8), 100 * 1024 * 1024)


def _expand_heads(a, num_heads, head_dim):
    """(rows, H) -> (rows, H*head_dim): broadcast head h's column across its lanes."""
    rows = a.shape[0]
    return jnp.concatenate(
        [jnp.broadcast_to(a[:, h:h + 1], (rows, head_dim))
         for h in range(num_heads)], axis=1)


# --------------------------------------------------------------------------- #
# Pass 1: fused Q/K/V projection (tiled matmul)
# --------------------------------------------------------------------------- #
def _qkv_proj_kernel(x_ref, w_ref, o_ref, acc_ref):
    """grid = (3, n_m, n_k): axis 0 selects W_q/W_k/W_v, axis 2 is the d_in reduction."""
    k = pl.program_id(2)

    @pl.when(k == 0)
    def _():
        acc_ref[...] = jnp.zeros_like(acc_ref)

    acc_ref[...] += jnp.dot(x_ref[...], w_ref[0],
                            preferred_element_type=jnp.float32)

    @pl.when(k == pl.num_programs(2) - 1)
    def _():
        o_ref[0] = acc_ref[...].astype(o_ref.dtype)


def _qkv_projection(x2d, w3, *, block_m, block_k, vmem_limit):
    M, d_in = x2d.shape
    _, _, d_out = w3.shape
    tm = _pick_tile(M, block_m, _sublane_multiple(x2d.dtype))
    tk = _pick_tile(d_in, block_k, 128)          # lane dim of the x block
    n_m, n_k = M // tm, d_in // tk

    el = jnp.dtype(x2d.dtype).itemsize
    cost = pl.CostEstimate(
        flops=int(2 * M * d_in * 3 * d_out),
        transcendentals=0,
        bytes_accessed=int(3 * M * d_in * el                 # x re-read per projection
                           + n_m * w3.size * w3.dtype.itemsize
                           + 3 * M * d_out * el))

    return pl.pallas_call(
        _qkv_proj_kernel,
        out_shape=jax.ShapeDtypeStruct((3, M, d_out), x2d.dtype),
        grid_spec=pltpu.PrefetchScalarGridSpec(
            num_scalar_prefetch=0,
            grid=(3, n_m, n_k),                              # reduction (d_in) last
            in_specs=[
                pl.BlockSpec((tm, tk), lambda j, m, k: (m, k)),            # x rows
                pl.BlockSpec((1, tk, d_out), lambda j, m, k: (j, k, 0)),   # W_{q,k,v}
            ],
            out_specs=pl.BlockSpec((1, tm, d_out), lambda j, m, k: (j, m, 0)),
            scratch_shapes=[pltpu.VMEM((tm, d_out), jnp.float32)]),
        compiler_params=pltpu.CompilerParams(
            dimension_semantics=("parallel", "parallel", "arbitrary"),
            vmem_limit_bytes=vmem_limit),
        cost_estimate=cost,
    )(x2d, w3)


# --------------------------------------------------------------------------- #
# Pass 2: causal flash attention + output projection
# --------------------------------------------------------------------------- #
def _mha_flash_kernel(q_ref, k_ref, v_ref, wo_ref, bo_ref, o_ref,
                      acc_scr, m_scr, l_scr,
                      *, num_heads, head_dim, block_q, block_kv, mxu_dtype):
    """grid = (B, n_q, n_kv); one (batch, q-tile) pair per (b, qi); ki sweeps KV tiles.

    q_ref/k_ref/v_ref : (1, 1, tq|tkv, d_out) slabs of the pre-projected QKV
                        (softmax scale already folded into W_q)
    wo_ref : (d_out, d_out),  bo_ref : (1, d_out),  o_ref : (1, tq, d_out)
    acc_scr: (tq, d_out) f32;  m_scr/l_scr: (tq, H) f32 (heads on lanes)
    """
    qi = pl.program_id(1)
    ki = pl.program_id(2)
    nk = pl.num_programs(2)
    q_start = qi * block_q
    kv_start = ki * block_kv
    neg_big = jnp.float32(-1e30)      # large finite negative (no exp(NaN) risk)

    @pl.when(ki == 0)
    def _init():
        acc_scr[...] = jnp.zeros_like(acc_scr)
        m_scr[...] = jnp.full_like(m_scr, neg_big)
        l_scr[...] = jnp.zeros_like(l_scr)

    def _tile_update(apply_mask):
        q = q_ref[0, 0]               # (tq,  d_out), mxu dtype, pre-scaled
        k = k_ref[0, 0]               # (tkv, d_out)
        v = v_ref[0, 0]               # (tkv, d_out)
        if apply_mask:                # mask is built only for diagonal tiles
            row = q_start + lax.broadcasted_iota(jnp.int32, (block_q, block_kv), 0)
            col = kv_start + lax.broadcasted_iota(jnp.int32, (block_q, block_kv), 1)
            causal = row >= col

        m_prev = m_scr[...]           # (tq, H)
        l_prev = l_scr[...]           # (tq, H)
        m_parts, psum_parts, pv_parts = [], [], []
        nt = (((1,), (1,)), ((), ()))   # contract last dims of both: no K transpose
        # TODO(synk): for num_heads >> 8 switch this to lax.fori_loop to bound
        # live ranges (trace-time unrolling inflates vreg pressure).
        for h in range(num_heads):
            sl = slice(h * head_dim, (h + 1) * head_dim)
            s = lax.dot_general(q[:, sl], k[:, sl], nt,
                                preferred_element_type=jnp.float32)    # (tq,tkv)
            if apply_mask:
                s = jnp.where(causal, s, neg_big)
            m_new = jnp.maximum(m_prev[:, h:h + 1],
                                jnp.max(s, axis=-1, keepdims=True))    # (tq,1)
            p = jnp.exp(s - m_new)                                     # (tq,tkv)
            pv = jnp.dot(p.astype(mxu_dtype), v[:, sl],
                         preferred_element_type=jnp.float32)           # (tq,Dh)
            m_parts.append(m_new)
            psum_parts.append(jnp.sum(p, axis=-1, keepdims=True))
            pv_parts.append(pv)

        m_new_all = jnp.concatenate(m_parts, axis=1)                   # (tq,H)
        alpha = jnp.exp(m_prev - m_new_all)                            # (tq,H)
        l_scr[...] = alpha * l_prev + jnp.concatenate(psum_parts, axis=1)
        m_scr[...] = m_new_all
        # single full-width accumulator update: no per-head partial-lane stores
        acc_scr[...] = (_expand_heads(alpha, num_heads, head_dim) * acc_scr[...]
                        + jnp.concatenate(pv_parts, axis=1))

    # Tile classification.  Fully-future tiles are skipped entirely (their K/V
    # DMA is elided by the clamped index_map); only diagonal tiles pay for the
    # iota mask and the per-element select.
    not_future = kv_start < q_start + block_q
    fully_past = kv_start + block_kv - 1 <= q_start

    @pl.when(jnp.logical_and(not_future, jnp.logical_not(fully_past)))
    def _diag_tile():
        _tile_update(apply_mask=True)

    @pl.when(fully_past)
    def _past_tile():
        _tile_update(apply_mask=False)

    @pl.when(ki == nk - 1)
    def _finalize():
        # TODO(synk): attention-weight dropout is identity here (eval mode).
        inv_l = pl.reciprocal(l_scr[...], approx=True)                 # (tq,H)
        ctx = acc_scr[...] * _expand_heads(inv_l, num_heads, head_dim)
        ctx = ctx.astype(mxu_dtype)                                    # (tq,d_out)
        out = jnp.dot(ctx, wo_ref[...], preferred_element_type=jnp.float32)
        out = out + bo_ref[...].astype(jnp.float32)
        o_ref[0] = out.astype(o_ref.dtype)


def _flash_attention(qkv, wo, bo2, *, num_heads, head_dim,
                     block_q, block_kv, vmem_limit):
    _, B, T, d_out = qkv.shape
    pack = _sublane_multiple(qkv.dtype)
    tq = _pick_tile(T, block_q, pack)
    tkv = _pick_tile(T, block_kv, pack)
    n_q, n_kv = T // tq, T // tkv
    mxu_dtype = qkv.dtype

    kernel = functools.partial(
        _mha_flash_kernel, num_heads=num_heads, head_dim=head_dim,
        block_q=tq, block_kv=tkv, mxu_dtype=mxu_dtype)

    # Clamp causally-skipped KV steps to the last valid block so they revisit
    # the same block and Pallas elides their DMA (compute is skipped in-kernel).
    # TODO(synk): for very long T, flatten to a 1-D grid over valid (qi, ki)
    # pairs via PrefetchScalarGridSpec lookup tables (splash-attention style).
    def _kv_block(qi, ki):
        return jnp.minimum(ki, (qi * tq + tq - 1) // tkv)

    el = jnp.dtype(qkv.dtype).itemsize
    n_valid = sum(min((qi * tq + tq - 1) // tkv + 1, n_kv) for qi in range(n_q))
    cost = pl.CostEstimate(
        flops=int(B * n_valid * 4 * tq * tkv * d_out          # QK^T + P.V
                  + 2 * B * T * d_out * d_out),               # output projection
        transcendentals=int(B * n_valid * num_heads * tq * tkv),
        bytes_accessed=int(B * T * d_out * el                 # Q (once per q-tile)
                           + 2 * B * n_valid * tkv * d_out * el   # K/V valid tiles
                           + wo.size * wo.dtype.itemsize
                           + bo2.size * bo2.dtype.itemsize
                           + B * T * d_out * el))             # output

    return pl.pallas_call(
        kernel,
        out_shape=jax.ShapeDtypeStruct((B, T, d_out), qkv.dtype),
        grid_spec=pltpu.PrefetchScalarGridSpec(
            num_scalar_prefetch=0,
            grid=(B, n_q, n_kv),                              # KV reduction axis last
            in_specs=[
                pl.BlockSpec((1, 1, tq, d_out),
                             lambda b, qi, ki: (0, b, qi, 0)),                  # Q
                pl.BlockSpec((1, 1, tkv, d_out),
                             lambda b, qi, ki: (1, b, _kv_block(qi, ki), 0)),   # K
                pl.BlockSpec((1, 1, tkv, d_out),
                             lambda b, qi, ki: (2, b, _kv_block(qi, ki), 0)),   # V
                pl.BlockSpec((d_out, d_out), lambda b, qi, ki: (0, 0)),         # W_out
                pl.BlockSpec((1, d_out), lambda b, qi, ki: (0, 0)),             # b_out
            ],
            out_specs=pl.BlockSpec((1, tq, d_out), lambda b, qi, ki: (b, qi, 0)),
            scratch_shapes=[
                pltpu.VMEM((tq, d_out), jnp.float32),         # ctx accumulator
                pltpu.VMEM((tq, num_heads), jnp.float32),     # running max (lanes=heads)
                pltpu.VMEM((tq, num_heads), jnp.float32),     # running denominator
            ]),
        compiler_params=pltpu.CompilerParams(
            dimension_semantics=("parallel", "parallel", "arbitrary"),
            vmem_limit_bytes=vmem_limit),
        cost_estimate=cost,
    )(qkv, qkv, qkv, wo, bo2)


# --------------------------------------------------------------------------- #
# top-level forward (matches the PyTorch module in eval mode, qvk_bias=False)
# --------------------------------------------------------------------------- #
def multi_head_attention(x, wq, wk, wv, wo, bo, *, num_heads,
                         block_q=256, block_kv=256,
                         proj_block_m=256, proj_block_k=512):
    """Causal multi-head attention forward.

    Weights are (in_features, out_features) so y = x @ W (+ b), i.e. W is the
    transpose of nn.Linear.weight.  block_q/block_kv default to 256 (fills the
    v6e/v7x MXU); pass 128 on v5e.
    """
    B, T, d_in = x.shape
    d_out = wq.shape[1]
    assert d_out % num_heads == 0, "d_out must be divisible by num_heads"
    head_dim = d_out // num_heads
    vmem_limit = _vmem_limit_bytes()

    # Pass 1: Q/K/V projection.  The 1/sqrt(head_dim) softmax scale is folded
    # into W_q here (one-off (d_in, d_out) weight preprocess, not on the hot path).
    w3 = jnp.stack([wq * (1.0 / math.sqrt(head_dim)), wk, wv]).astype(x.dtype)
    qkv = _qkv_projection(x.reshape(B * T, d_in), w3,
                          block_m=proj_block_m, block_k=proj_block_k,
                          vmem_limit=vmem_limit)               # (3, B*T, d_out)
    qkv = qkv.reshape(3, B, T, d_out)

    # Pass 2: causal flash attention + output projection (+ bias).
    return _flash_attention(qkv, wo.astype(x.dtype), jnp.reshape(bo, (1, d_out)),
                            num_heads=num_heads, head_dim=head_dim,
                            block_q=block_q, block_kv=block_kv,
                            vmem_limit=vmem_limit)


# --------------------------------------------------------------------------- #
# pure-JAX reference (mirrors the PyTorch forward, eval mode)
# --------------------------------------------------------------------------- #
def reference_mha(x, wq, wk, wv, wo, bo, mask, *, num_heads):
    B, T, d_in = x.shape
    d_out = wq.shape[1]
    head_dim = d_out // num_heads
    q = (x @ wq).reshape(B, T, num_heads, head_dim).transpose(0, 2, 1, 3)
    k = (x @ wk).reshape(B, T, num_heads, head_dim).transpose(0, 2, 1, 3)
    v = (x @ wv).reshape(B, T, num_heads, head_dim).transpose(0, 2, 1, 3)
    scores = q @ jnp.swapaxes(k, -1, -2)
    scores = jnp.where(mask == 0.0, -jnp.inf, scores)
    w = jax.nn.softmax(scores / jnp.sqrt(jnp.float32(head_dim)), axis=-1)
    ctx = (w @ v).transpose(0, 2, 1, 3).reshape(B, T, d_out)
    return ctx @ wo + bo


if __name__ == "__main__":
    # small shapes: batch=2, seq=8, d_in=32, d_out=32, num_heads=4
    B, T, D_IN, D_OUT, H = 2, 8, 32, 32, 4
    key = jax.random.PRNGKey(0)
    kx, kq, kk, kv, ko, kb = jax.random.split(key, 6)

    x = jax.random.normal(kx, (B, T, D_IN), dtype=jnp.float32)
    wq = jax.random.normal(kq, (D_IN, D_OUT), dtype=jnp.float32) * 0.1
    wk = jax.random.normal(kk, (D_IN, D_OUT), dtype=jnp.float32) * 0.1
    wv = jax.random.normal(kv, (D_IN, D_OUT), dtype=jnp.float32) * 0.1
    wo = jax.random.normal(ko, (D_OUT, D_OUT), dtype=jnp.float32) * 0.1
    bo = jax.random.normal(kb, (D_OUT,), dtype=jnp.float32) * 0.1

    out = multi_head_attention(x, wq, wk, wv, wo, bo, num_heads=H)
    out = jax.block_until_ready(out)

    mask = jnp.tril(jnp.ones((T, T), dtype=jnp.float32))
    ref = reference_mha(x, wq, wk, wv, wo, bo, mask, num_heads=H)
    assert out.shape == (B, T, D_OUT)
    # tolerance covers approx-reciprocal (EUP) + online-softmax summation order
    assert jnp.allclose(out, ref, atol=2e-3, rtol=2e-3), "mismatch vs reference"

    print("KERNEL_OK")
</pallas_src>

<mosaic_0001>
module attributes {stable_mosaic.version = 11 : i64} {
  func.func @_qkv_proj_kernel(%arg0: i32, %arg1: i32, %arg2: i32, %arg3: memref<16x32xf32, #tpu.memory_space<vmem>>, %arg4: memref<1x32x32xf32, #tpu.memory_space<vmem>>, %arg5: memref<1x16x32xf32, #tpu.memory_space<vmem>>, %arg6: memref<16x32xf32, #tpu.memory_space<vmem>>) attributes {dimension_semantics = [#tpu.dimension_semantics<parallel>, #tpu.dimension_semantics<parallel>, #tpu.dimension_semantics<arbitrary>], iteration_bounds = array<i64: 3, 1, 1>, scalar_prefetch = 0 : i64, scratch_operands = 1 : i64, tpu.core_type = #tpu.core_type<tc>, window_params = [{transform_indices = @transform_0, window_bounds = array<i64: 16, 32>}, {transform_indices = @transform_1, window_bounds = array<i64: 1, 32, 32>}, {transform_indices = @transform_2, window_bounds = array<i64: 1, 16, 32>}]} {
    %c0_i32 = arith.constant 0 : i32
    %0 = arith.cmpi eq, %arg2, %c0_i32 : i32
    %1 = arith.extui %0 : i1 to i32
    %c0_i32_0 = arith.constant 0 : i32
    %2 = arith.cmpi ne, %1, %c0_i32_0 : i32
    scf.if %2 {
      %cst_11 = arith.constant 0.000000e+00 : f32
      %13 = vector.broadcast %cst_11 : f32 to vector<16x32xf32>
      %c0_12 = arith.constant 0 : index
      %c0_13 = arith.constant 0 : index
      %14 = vector.load %arg6[%c0_12, %c0_13] : memref<16x32xf32, #tpu.memory_space<vmem>>, vector<16x32xf32>
      tpu.vector_store %arg6[%c0_12, %c0_13], %13 {strides = array<i32>} : memref<16x32xf32, #tpu.memory_space<vmem>>, vector<16x32xf32>,
    } else {
    }
    %c0 = arith.constant 0 : index
    %c0_1 = arith.constant 0 : index
    %3 = vector.load %arg6[%c0, %c0_1] : memref<16x32xf32, #tpu.memory_space<vmem>>, vector<16x32xf32>
    %c0_2 = arith.constant 0 : index
    %c0_3 = arith.constant 0 : index
    %4 = vector.load %arg3[%c0_2, %c0_3] : memref<16x32xf32, #tpu.memory_space<vmem>>, vector<16x32xf32>
    %c0_4 = arith.constant 0 : index
    %c0_5 = arith.constant 0 : index
    %c0_6 = arith.constant 0 : index
    %5 = vector.load %arg4[%c0_4, %c0_5, %c0_6] : memref<1x32x32xf32, #tpu.memory_space<vmem>>, vector<1x32x32xf32>
    %6 = vector.shape_cast %5 : vector<1x32x32xf32> to vector<32x32xf32>
    %cst = arith.constant dense<0.000000e+00> : vector<16x32xf32>
    %7 = tpu.matmul %4, %6, %cst {dimension_numbers = #tpu.dot_dimension_numbers<[1], [0], [0], [1], [0, 0, 1, 1], [], []>} : vector<16x32xf32>, vector<32x32xf32>, vector<16x32xf32> -> vector<16x32xf32>
    %8 = arith.addf %3, %7 : vector<16x32xf32>
    %c0_7 = arith.constant 0 : index
    %c0_8 = arith.constant 0 : index
    %9 = vector.load %arg6[%c0_7, %c0_8] : memref<16x32xf32, #tpu.memory_space<vmem>>, vector<16x32xf32>
    tpu.vector_store %arg6[%c0_7, %c0_8], %8 {strides = array<i32>} : memref<16x32xf32, #tpu.memory_space<vmem>>, vector<16x32xf32>,
    %c0_i32_9 = arith.constant 0 : i32
    %10 = arith.cmpi eq, %arg2, %c0_i32_9 : i32
    %11 = arith.extui %10 : i1 to i32
    %c0_i32_10 = arith.constant 0 : i32
    %12 = arith.cmpi ne, %11, %c0_i32_10 : i32
    scf.if %12 {
      %c0_11 = arith.constant 0 : index
      %c0_12 = arith.constant 0 : index
      %13 = vector.load %arg6[%c0_11, %c0_12] : memref<16x32xf32, #tpu.memory_space<vmem>>, vector<16x32xf32>
      %c0_13 = arith.constant 0 : index
      %c0_14 = arith.constant 0 : index
      %c0_15 = arith.constant 0 : index
      %14 = vector.load %arg5[%c0_13, %c0_14, %c0_15] : memref<1x16x32xf32, #tpu.memory_space<vmem>>, vector<1x16x32xf32>
      %15 = vector.shape_cast %14 : vector<1x16x32xf32> to vector<16x32xf32>
      %16 = vector.shape_cast %13 : vector<16x32xf32> to vector<1x16x32xf32>
      tpu.vector_store %arg5[%c0_13, %c0_14, %c0_15], %16 {strides = array<i32>} : memref<1x16x32xf32, #tpu.memory_space<vmem>>, vector<1x16x32xf32>,
    } else {
    }
    return
  }
  func.func @transform_0(%arg0: i32, %arg1: i32, %arg2: i32) -> (i32, i32) {
    %c0_i32 = arith.constant 0 : i32
    return %arg1, %arg2 : i32, i32
  }
  func.func @transform_1(%arg0: i32, %arg1: i32, %arg2: i32) -> (i32, i32, i32) {
    %c0_i32 = arith.constant 0 : i32
    %c0_i32_0 = arith.constant 0 : i32
    return %arg0, %arg2, %c0_i32 : i32, i32, i32
  }
  func.func @transform_2(%arg0: i32, %arg1: i32, %arg2: i32) -> (i32, i32, i32) {
    %c0_i32 = arith.constant 0 : i32
    %c0_i32_0 = arith.constant 0 : i32
    return %arg0, %arg1, %c0_i32 : i32, i32, i32
  }
}

</mosaic_0001>

<bundles_post_ra>
// kernel: tpu_custom_call.1
= control target key start
LH: loop header
LB: loop body
LE: loop exit
PB: predicated region body
PF: predicated region fallthrough
CT: control target
= control target key end

     0   :  { %7 = vsyncpa [#allocation4], 0  ;;  %s919_s0 = inlined_call_operand.hbm [shape: f32[16,32], index: 0, kind: input, shape index: {}]   ;;  %s920_s1 = inlined_call_operand.hbm [shape: f32[3,32,32], index: 1, kind: input, shape index: {}]   ;;  %s921_s2 = inlined_call_operand.hbm [shape: f32[3,16,32], index: 2, kind: output, shape index: {}]  }
   0x1   :  { %8 = vsyncpa [#allocation7], 0 }
   0x2   :  { %10 = vsyncpa [#allocation7 + $0x1], 0 }
   0x3   :  { %11 = vsyncpa [#allocation5], 0 }
   0x4   :  { %13 = vsyncpa [#allocation5 + $0x1], 0  ;;  %s725_s9 = smov 0   ;;  %s727_s10 = smov 0  }
   0x5   :  { %s729_s11 = smov 0   ;;  %s731_s12 = smov 0  }
   0x6   :  { %s733_s13 = smov 0   ;;  %s735_s14 = smov 0  }
   0x7 LB: > { %s446_s15 = sadd.s32 4294967295, %s700_s14   ;;  %s447_s16 = sadd.s32 4294967294, %s700_s14   ;;  %s700_s14 = sphi %s735_s14, %s19_s14   ;;  %s696_s13 = sphi %s733_s13, %s940_s13   ;;  %s692_s12 = sphi %s731_s12, %s939_s12   ;;  %s688_s11 = sphi %s729_s11, %s938_s11   ;;  %s684_s10 = sphi %s727_s10, %s937_s10   ;;  %s680_s9 = sphi %s725_s9, %s936_s9  }
   0x8   : > { %p88_p0 = scmp.ne.s32.totalorder %s684_s10, %s680_s9  ;;  %p759_p1 = scmp.eq.s32.totalorder %s446_s15, 0 }
   0x9   : > { %p763_p2 = scmp.eq.s32.totalorder %s446_s15, 2  ;;  %p120_p3 = scmp.eq.s32.totalorder %s447_s16, 2 }
   0xa   : > { %p769_p4 = por %p759_p1, %p88_p0  ;;  %p448_p5 = scmp.ge.s32.totalorder %s700_s14, 1 }
   0xb   : > { %p774_p6 = por %p120_p3, %p88_p0  ;;  %p127_p7 = scmp.lt.s32.totalorder %s700_s14, 4 }
   0xc   : > { %s702_s22 = smov [#allocation3]   ;;  %s38_s25 = sadd.s32 1, %s696_s13 }
   0xd   : > { %s927_s20 = scalar_select %p774_p6, 1, 0 }
   0xe   : > { %p779_p8 = pnand %p448_p5, %p127_p7  ;;  %s143_s23 = sshll.u32 %s702_s22, 4  ;;  %s144_s23 = int_to_ptr.vmem [resolvable:$true] %s143_s23 }
   0xf   : > { %s573_s26 = scalar_lea.vmem %s144_s23, 256  ;;  %p581_p3 = scmp.lt.s32.totalorder %s144_s23, %s144_s23 }
  0x10   : > { %p492_p9 = pneg %p779_p8  ;;  %p574_p12 = scmp.ne.s32.totalorder %s144_s23, %s573_s26 }
  0x11   : > { %p582_p5 = scmp.lt.s32.totalorder %s573_s26, %s573_s26 }
  0x12   : > { %p787_p10 = pnand %p492_p9, %p759_p1 }
  0x13   : > { %p583_p7 = por %p582_p5, %p581_p3 }
  0x14   : > { %p564_p11 = pneg %p787_p10 }
  0x16   : > { %p576_p13 = pnand %p574_p12, %p564_p11 }
  0x18   : > { %p577_p0 = pneg %p576_p13 }
  0x1a   : > { %p584_p6 = pnand %p583_p7, %p577_p0 }
  0x1c   : > { %587 = shalt.err (!%p584_p6)
}
  0x1d   : > { %s922_s27 = smov 128   ;;  %s704_s28 = smov 8  }
  0x1e   : > { %495 = dma.hbm_to_vmem [thread:$0]  (!%p787_p10), %s919_s0, 256, %s144_s23, [#allocation4], %s922_s27, %s922_s27, %s704_s28  }
  0x1f   : > { %p40_p6 = scmp.ge.s32.totalorder %s38_s25, 3  ;;  %s75_s3 = sadd.s32 1, %s688_s11 }
  0x20   : > { %p82_p9 = scmp.ne.s32.totalorder %s688_s11, %s684_s10  ;;  %p83_p11 = scmp.eq.s32.totalorder %s700_s14, 0 }
  0x21   : > { %s942_s25 = smov (%p40_p6, %s38_s25), 0  ;;  %p505_p0 = scmp.lt.s32.totalorder %s700_s14, 3 }
  0x22   : > { %p808_p12 = por %p83_p11, %p82_p9  ;;  %p814_p13 = por %p763_p2, %p82_p9 }
  0x23   : > { %s70_s6 = ssub.s32 %s696_s13, %s942_s25  ;;  %s157_s7 = sand.u32 1, %s688_s11  }
  0x24   : > { %s931_s5 = scalar_select %p814_p13, 1, 0 }
  0x25   : > { %p73_p10 = scmp.eq.s32.totalorder %s70_s6, 0  ;;  %s451_s8 = sshll.u32 %s157_s7, 5 }
  0x26   : > { %s465_s16 = sshll.u32 %s696_s13, 9  ;;  %s161_s26 = scalar_lea.vmem [#allocation6], %s451_s8 }
  0x27   : > { %s823_s15 = scalar_select %p73_p10, %s688_s11, %s75_s3  }
  0x28   : > { %s169_s24 = scalar_lea.hbm %s920_s1, %s465_s16  ;;  %s170_s29 = sshll.u32 %s161_s26, 4  ;;  %s171_s29 = int_to_ptr.vmem [resolvable:$true] %s170_s29 }
  0x29   : > { %p831_p2 = pnand %p505_p0, %p808_p12  ;;  %s158_s30 = scalar_lea.sflag [#allocation7], %s157_s7 }
  0x2a   : > { %s601_s6 = scalar_lea.vmem %s171_s29, 512  ;;  %s705_s3 = smov [#allocation6]  }
  0x2b   : > { %p590_p3 = pneg %p831_p2  ;;  %p602_p5 = scmp.ne.s32.totalorder %s171_s29, %s601_s6 }
  0x2c   : > { %s606_s27 = sshll.u32 %s705_s3, 4  ;;  %s607_s27 = int_to_ptr.vmem [resolvable:$false] %s606_s27 }
  0x2d   : > { %p604_p7 = pnand %p602_p5, %p590_p3  ;;  %s608_s16 = scalar_lea.vmem %s607_s27, 1024 }
  0x2e   : > { %p609_p9 = scmp.lt.s32.totalorder %s171_s29, %s607_s27  ;;  %p610_p11 = scmp.lt.s32.totalorder %s608_s16, %s601_s6 }
  0x2f   : > { %p605_p6 = pneg %p604_p7 }
  0x30   : > { %p611_p10 = por %p610_p11, %p609_p9 }
  0x32   : > { %p612_p13 = pnand %p611_p10, %p605_p6 }
  0x34   : > { %615 = shalt.err (!%p612_p13)
}
  0x35   : > { %s933_s4 = smov 128   ;;  %182 = sbr.rel (%p779_p8) target bundleno = 291 (0x123), region = 28 }
  0x36   : > { %499 = dma.hbm_to_vmem [thread:$0]  (!%p831_p2), %s169_s24, 512, %s171_s29, %s158_s30, %s933_s4, %s933_s4, %s704_s28  }
  0x3a   : > { %667 = dma.done.wait (%p759_p1), [#allocation4], 256  }
  0x3b   : > { %669 = vsyncadd (%p759_p1), [#allocation4], 4294967040  ;;  %s849_s27 = sand.u32 1, %s684_s10  }
  0x3c   : > { %s456_s7 = sshll.u32 %s849_s27, 5  ;;  %s189_s8 = scalar_lea.sflag [#allocation7], %s849_s27 }
  0x3d   : > { %s192_s22 = scalar_lea.vmem [#allocation6], %s456_s7 }
  0x3e   : > { %671 = dma.done.wait (%p769_p4), %s189_s8, 512  }
  0x3f   : > { %673 = vsyncadd (%p769_p4), %s189_s8, 4294966784  ;;  %vm220_vm0 = vcmask 261120   ;;  %v706_v0 = vmov 0.0   ;;  %v230_v1 = vld [vmem:[%s192_s22 + $0x18] sm:$0xff]  ;;  %v229_v2 = vld [vmem:[%s192_s22 + $0x10] sm:$0xff]  ;;  %s457_s17 = sshll.u32 %s849_s27, 4 }
  0x40   : > { %222 = vst.msk [vmem:[#allocation2 + $0x8] sm:$0xff] %vm220_vm0, %v706_v0  ;;  %221 = vst.msk [vmem:[#allocation2] sm:$0xff] %vm220_vm0, %v706_v0  ;;  %473 = vmatprep.subr.mxu0 %v230_v1  ;;  %v225_v3 = vld [vmem:[#allocation3] sm:$0xff]  ;;  %v228_v4 = vld [vmem:[%s192_s22 + $0x8] sm:$0xff]  ;;  %s466_s19 = sshll.u32 %s692_s12, 8  ;;  %s212_s21 = scalar_lea.vmem [#allocation8], %s457_s17 }
  0x41   : > { %474 = vmatpush3.msra.mxu0 %v230_v1  ;;  %481 = vmatprep.mubr.msk.f32.mxu0 %vm220_vm0, %v225_v3  ;;  %v227_v5 = vld [vmem:[%s192_s22] sm:$0xff]  ;;  %v226_v6 = vld [vmem:[#allocation3 + $0x8] sm:$0xff]  ;;  %s340_s28 = sshll.u32 %s212_s21, 4  ;;  %s868_s26 = scalar_lea.hbm %s921_s2, %s466_s19  ;;  %s870_s28 = int_to_ptr.vmem [resolvable:$true] %s340_s28 }
  0x42   : > { %475 = vmatprep.subr.mxu0 %v229_v2  ;;  %s325_s29 = scalar_lea.sflag [#allocation5], %s849_s27  ;;  %s616_s12 = scalar_lea.vmem %s870_s28, 256 }
  0x43   : > { %476 = vmatpush3.msra.mxu0 %v229_v2  ;;  %p617_p1 = scmp.ne.s32.totalorder %s870_s28, %s616_s12  ;;  %p934_p4 = scmp.ne.s32.totalorder %s931_s5, 0 }
  0x44   : > { %477 = vmatprep.subr.mxu0 %v228_v4  ;;  %s707_s18 = smov [#allocation8]  }
  0x45   : > { %478 = vmatpush3.msra.mxu0 %v228_v4  ;;  %p618_p8 = pnand %p617_p1, %p934_p4  ;;  %s620_s30 = sshll.u32 %s707_s18, 4  ;;  %s621_s30 = int_to_ptr.vmem [resolvable:$false] %s620_s30 }
  0x46   : > { %479 = vmatprep.subr.mxu0 %v227_v5  ;;  %s622_s6 = scalar_lea.vmem %s621_s30, 512  ;;  %p623_p13 = scmp.lt.s32.totalorder %s870_s28, %s621_s30 }
  0x47   : > { %480 = vmatpush3.msra.mxu0 %v227_v5  ;;  %v224_v7 = vld [vmem:[#allocation2 + $0x8] sm:$0xff]  ;;  %v223_v9 = vld [vmem:[#allocation2] sm:$0xff]  ;;  %p619_p12 = pneg %p618_p8  ;;  %p624_p0 = scmp.lt.s32.totalorder %s622_s6, %s616_s12 }
  0x48   : > { %482 = vmatmul.mubr.msk.f32.vlgmr.msra.gmra.mxu0 %vm220_vm0, %v226_v6 }
  0x49   : > { %p625_p2 = por %p624_p0, %p623_p13 }
  0x4b   : > { %p626_p3 = pnand %p625_p2, %p619_p12 }
 0x108   : > { %v483_v8 = vpop.f32.mrf.mxu0 }
 0x109   : > { %v314_v10 = vadd.f32 %v483_v8, %v224_v7 }
 0x10a   : > { %v304_v11 = vpop.f32.mrf.mxu0 }
 0x10b   : > { %316 = vst.msk [vmem:[#allocation2 + $0x8] sm:$0xff] %vm220_vm0, %v314_v10  ;;  %v313_v12 = vadd.f32 %v304_v11, %v223_v9 }
 0x10d   : > { %315 = vst.msk [vmem:[#allocation2] sm:$0xff] %vm220_vm0, %v313_v12 }
 0x112   : > { %v321_v13 = vld [vmem:[#allocation2 + $0x8] sm:$0xff] }
 0x113   : > { %323 = vst.msk [vmem:[%s212_s21 + $0x8] sm:$0xff] %vm220_vm0, %v321_v13 }
 0x114   : > { %v320_v14 = vld [vmem:[#allocation2] sm:$0xff] }
 0x115   : > { %322 = vst.msk [vmem:[%s212_s21] sm:$0xff] %vm220_vm0, %v320_v14 }
 0x116   : > { %629 = shalt.err (!%p626_p3)
}
 0x117   : > { %s630_s3 = scalar_lea.hbm %s868_s26, 256  ;;  %s634_s7 = scalar_lea.hbm %s921_s2, 768 }
 0x118   : > { %p631_p5 = scmp.ne.s32.totalorder %s868_s26, %s630_s3  ;;  %p635_p9 = scmp.lt.s32.totalorder %s868_s26, %s921_s2 }
 0x119   : > { %p636_p11 = scmp.lt.s32.totalorder %s634_s7, %s630_s3 }
 0x11a   : > { %p632_p7 = pnand %p631_p5, %p934_p4 }
 0x11b   : > { %p637_p10 = por %p636_p11, %p635_p9 }
 0x11c   : > { %p633_p6 = pneg %p632_p7 }
 0x11e   : > { %p638_p1 = pnand %p637_p10, %p633_p6 }
 0x120   : > { %641 = shalt.err (!%p638_p1)
}
 0x121   : > { %s708_s17 = smov 128   ;;  %s709_s19 = smov 8  }
 0x122   : > { %490 = dma.vmem_to_hbm [thread:$0]  (%p934_p4), %s870_s28, 256, %s868_s26, %s325_s29, %s708_s17, %s708_s17, %s709_s19  }
 0x123 PF: > { %p507_p8 = scmp.ge.s32.totalorder %s700_s14, 2  ;;  %s355_s21 = sand.u32 1, %s680_s9  }
 0x124   : > { %p935_p12 = scmp.ne.s32.totalorder %s927_s20, 0  ;;  %s356_s23 = scalar_lea.sflag [#allocation5], %s355_s21 }
 0x126   : > { %p501_p13 = pnand %p507_p8, %p935_p12 }
 0x128   : > { %p502_p0 = pneg %p501_p13 }
 0x12a   : > { %675 = dma.done.wait (%p502_p0), %s356_s23, 256  }
 0x12b   : > { %677 = vsyncadd (%p502_p0), %s356_s23, 4294967040  ;;  %s19_s14 = sadd.s32 1, %s700_s14   ;;  %s936_s9 = smov %s684_s10 }
 0x12c   : > { %p16_p2 = scmp.ge.s32.totalorder %s19_s14, 5   ;;  %s937_s10 = smov %s688_s11 }
 0x12d   : > { %s938_s11 = smov %s823_s15  ;;  %s939_s12 = smov %s696_s13 }
 0x12e   : > { %s940_s13 = smov %s942_s25  ;;  %18 = sbr.rel (!%p16_p2) target bundleno = 7 (0x7), region = 87 }
 0x133   :  { %361 = vsyncpa [#allocation4], 1 }
 0x134   :  { %363 = vsyncpa [#allocation4 + $0x1], 1 }
 0x135   :  { %364 = vsyncpa [#allocation7], 1 }
 0x136   :  { %366 = vsyncpa [#allocation7 + $0x1], 1 }
 0x137   :  { %367 = vsyncpa [#allocation5], 1 }
 0x138   :  { %369 = vsyncpa [#allocation5 + $0x1], 1 }

</bundles_post_ra>
